<compile_context>
chip_gen: v7x
topology: tpu7x:2x2x1
jax: 0.10.0
libtpu: 0.0.40
codegen_flags: <defaults>
</compile_context>

<pallas_src>
import jax
import jax.numpy as jnp
import numpy as np
from jax.experimental import pallas as pl
from jax.experimental.pallas import tpu as pltpu

ACTIONS = [0, 1, 2, 3, 6, 8, 9]
A_PAD = 128  # lane-dense padded width for the output layer (multiple of 128)


def rec_softmax_actor_kernel(
    x_ref,                  # (T*B, O)  time-major flattened: row = t*B + b
    h0_ref,                 # (B, H)
    w1_ref, b1_ref,         # (O, H), (1, H)
    wih_ref, bih_ref,       # (H, 3H), (1, 3H)   gate order r, z, n
    whh_ref, bhh_ref,       # (H, 3H), (1, 3H)
    w2_ref, b2_ref,         # (H, H), (1, H)
    w3_ref, b3_ref,         # (H, A_PAD), (1, A_PAD)  zero / -1e30 padded
    probs_ref,              # (T*B, A_PAD)
    hout_ref,               # (B, H)
    gru_scr,                # (T*B, H) scratch: GRU outputs, time-major
):
    TB, _ = x_ref.shape
    B, H = h0_ref.shape
    T = TB // B
    f32 = jnp.float32

    # ---- hidden_1 + tanh: one flat 2-D matmul over all timesteps ----
    h1 = jnp.tanh(
        jnp.dot(x_ref[...].astype(f32), w1_ref[...], preferred_element_type=f32)
        + b1_ref[...])                                        # (T*B, H)

    # ---- input-side GRU gates hoisted off the serial path (b_ih folded in) ----
    gi_all = (jnp.dot(h1, wih_ref[...], preferred_element_type=f32)
              + bih_ref[...])                                 # (T*B, 3H)

    whh = whh_ref[...]                                        # (H, 3H)
    bhh = jnp.broadcast_to(bhh_ref[...], (B, 3 * H))          # hoisted broadcast

    # ---- sequential GRU recurrence (fully unrolled, static indices) ----
    h = h0_ref[...].astype(f32)
    for t in range(T):
        gi = gi_all[t * B:(t + 1) * B, :]                     # (B, 3H) static slice
        gh = jnp.dot(h, whh, preferred_element_type=f32) + bhh
        rz = jax.nn.sigmoid(gi[:, :2 * H] + gh[:, :2 * H])    # fused r,z activation
        r = rz[:, :H]
        z = rz[:, H:]
        n = jnp.tanh(gi[:, 2 * H:] + r * gh[:, 2 * H:])
        h = n + z * (h - n)
        gru_scr[t * B:(t + 1) * B, :] = h
    hout_ref[...] = h.astype(hout_ref.dtype)

    # ---- hidden_2 + tanh (flat 2-D) ----
    g = gru_scr[...]                                          # (T*B, H)
    h2 = jnp.tanh(jnp.dot(g, w2_ref[...], preferred_element_type=f32)
                  + b2_ref[...])                              # (T*B, H)

    # ---- output linear (lane-dense, padded) + stable softmax over last axis ----
    logits = jnp.dot(h2, w3_ref[...], preferred_element_type=f32) + b3_ref[...]
    m = jnp.max(logits, axis=-1, keepdims=True)
    e = jnp.exp(logits - m)                                   # padded cols exp to 0
    probs_ref[...] = (e / jnp.sum(e, axis=-1, keepdims=True)).astype(probs_ref.dtype)


def make_params(key, o_size, a_size, h_size):
    """Deterministic parameter init mirroring the PyTorch module's shapes/init style."""
    ks = jax.random.split(key, 8)
    gain_tanh = 5.0 / 3.0  # th.nn.init.calculate_gain('tanh')

    def xavier_uniform(k, fan_in, fan_out, gain):
        limit = gain * np.sqrt(6.0 / (fan_in + fan_out))
        return jax.random.uniform(k, (fan_in, fan_out), jnp.float32, -limit, limit)

    lim = 1.0 / np.sqrt(h_size)
    params = dict(
        # hidden_1 / hidden_2: xavier_uniform(gain=tanh), bias=0
        w1=xavier_uniform(ks[0], o_size, h_size, gain_tanh),
        b1=jnp.zeros((1, h_size), jnp.float32),
        w2=xavier_uniform(ks[1], h_size, h_size, gain_tanh),
        b2=jnp.zeros((1, h_size), jnp.float32),
        # output: default nn.Linear init (uniform(-1/sqrt(fan_in), 1/sqrt(fan_in)))
        w3=jax.random.uniform(ks[2], (h_size, a_size), jnp.float32, -lim, lim),
        b3=jax.random.uniform(ks[3], (1, a_size), jnp.float32, -lim, lim),
        # GRU: uniform(-1/sqrt(H), 1/sqrt(H)); stored transposed as (in, 3H), gates r,z,n
        wih=jax.random.uniform(ks[4], (h_size, 3 * h_size), jnp.float32, -lim, lim),
        whh=jax.random.uniform(ks[5], (h_size, 3 * h_size), jnp.float32, -lim, lim),
        bih=jax.random.uniform(ks[6], (1, 3 * h_size), jnp.float32, -lim, lim),
        bhh=jax.random.uniform(ks[7], (1, 3 * h_size), jnp.float32, -lim, lim),
    )
    return params


@jax.jit
def rec_softmax_actor_forward(x, h0, params):
    """x: (B, T, O) float32; h0: (1, B, H) float32 (PyTorch GRU hidden layout)."""
    B, T, O = x.shape
    H = params["w1"].shape[1]
    A = params["w3"].shape[1]

    # Layout plumbing kept outside the kernel: time-major flatten (row = t*B + b).
    x_tm = jnp.transpose(x, (1, 0, 2)).reshape(T * B, O)
    h0_sq = h0.reshape(B, H)

    # Lane-dense padding of the output layer: zero weight columns, -1e30 bias so the
    # padded logits exp to exactly 0 inside the kernel's softmax.
    w3p = jnp.zeros((H, A_PAD), jnp.float32).at[:, :A].set(params["w3"])
    b3p = jnp.full((1, A_PAD), -1e30, jnp.float32).at[:, :A].set(params["b3"])

    vmem = pl.BlockSpec(memory_space=pltpu.MemorySpace.VMEM)
    probs_pad, h_out = pl.pallas_call(
        rec_softmax_actor_kernel,
        out_shape=(jax.ShapeDtypeStruct((T * B, A_PAD), jnp.float32),
                   jax.ShapeDtypeStruct((B, H), jnp.float32)),
        in_specs=[vmem] * 12,
        out_specs=(vmem, vmem),
        scratch_shapes=[pltpu.VMEM((T * B, H), jnp.float32)],  # GRU outputs, time-major
    )(x_tm, h0_sq,
      params["w1"], params["b1"],
      params["wih"], params["bih"], params["whh"], params["bhh"],
      params["w2"], params["b2"],
      w3p, b3p)

    probs = jnp.transpose(probs_pad.reshape(T, B, A_PAD)[:, :, :A], (1, 0, 2))
    return probs, h_out.reshape(1, B, H)


def reference_forward(x, h0, p):
    """Plain-JAX reference with identical semantics (for a sanity check)."""
    B, T, _ = x.shape
    H = p["w1"].shape[1]
    h1 = jnp.tanh(x @ p["w1"] + p["b1"])               # (B, T, H)
    h = h0.reshape(B, H)
    outs = []
    for t in range(T):
        x_t = h1[:, t, :]
        gi = x_t @ p["wih"] + p["bih"]
        gh = h @ p["whh"] + p["bhh"]
        r = jax.nn.sigmoid(gi[:, 0:H] + gh[:, 0:H])
        z = jax.nn.sigmoid(gi[:, H:2 * H] + gh[:, H:2 * H])
        n = jnp.tanh(gi[:, 2 * H:] + r * gh[:, 2 * H:])
        h = (1.0 - z) * n + z * h
        outs.append(h)
    g = jnp.stack(outs, axis=1)                        # (B, T, H)
    h2 = jnp.tanh(g @ p["w2"] + p["b2"])
    logits = h2 @ p["w3"] + p["b3"]
    return jax.nn.softmax(logits, axis=-1), h.reshape(1, B, H)


if __name__ == "__main__":
    B, T = 2, 8
    o_size, h_size = 32, 32
    a_size = len(ACTIONS)  # 7

    key = jax.random.PRNGKey(0)
    k_param, k_x, k_h = jax.random.split(key, 3)
    params = make_params(k_param, o_size, a_size, h_size)

    x = jax.random.normal(k_x, (B, T, o_size), jnp.float32)
    h0 = jax.random.normal(k_h, (1, B, h_size), jnp.float32)

    probs, h_new = rec_softmax_actor_forward(x, h0, params)
    jax.block_until_ready((probs, h_new))

    # sanity check against a pure-JAX reference
    probs_ref, h_ref = reference_forward(x, h0, params)
    np.testing.assert_allclose(np.asarray(probs), np.asarray(probs_ref), atol=1e-2, rtol=1e-2)
    np.testing.assert_allclose(np.asarray(h_new), np.asarray(h_ref), atol=1e-2, rtol=1e-2)
    assert probs.shape == (B, T, a_size) and h_new.shape == (1, B, h_size)
    assert np.allclose(np.asarray(probs).sum(-1), 1.0, atol=1e-5)

    print("KERNEL_OK")
</pallas_src>

<mosaic_0001>
module attributes {stable_mosaic.version = 11 : i64} {
  func.func @rec_softmax_actor_kernel(%arg0: memref<16x32xf32, #tpu.memory_space<vmem>>, %arg1: memref<2x32xf32, #tpu.memory_space<vmem>>, %arg2: memref<32x32xf32, #tpu.memory_space<vmem>>, %arg3: memref<1x32xf32, #tpu.memory_space<vmem>>, %arg4: memref<32x96xf32, #tpu.memory_space<vmem>>, %arg5: memref<1x96xf32, #tpu.memory_space<vmem>>, %arg6: memref<32x96xf32, #tpu.memory_space<vmem>>, %arg7: memref<1x96xf32, #tpu.memory_space<vmem>>, %arg8: memref<32x32xf32, #tpu.memory_space<vmem>>, %arg9: memref<1x32xf32, #tpu.memory_space<vmem>>, %arg10: memref<32x128xf32, #tpu.memory_space<vmem>>, %arg11: memref<1x128xf32, #tpu.memory_space<vmem>>, %arg12: memref<16x128xf32, #tpu.memory_space<vmem>>, %arg13: memref<2x32xf32, #tpu.memory_space<vmem>>, %arg14: memref<16x32xf32, #tpu.memory_space<vmem>>) attributes {dimension_semantics = [], scalar_prefetch = 0 : i64, scratch_operands = 1 : i64, tpu.core_type = #tpu.core_type<tc>} {
    %c0 = arith.constant 0 : index
    %c0_0 = arith.constant 0 : index
    %0 = vector.load %arg0[%c0, %c0_0] : memref<16x32xf32, #tpu.memory_space<vmem>>, vector<16x32xf32>
    %c0_1 = arith.constant 0 : index
    %c0_2 = arith.constant 0 : index
    %1 = vector.load %arg2[%c0_1, %c0_2] : memref<32x32xf32, #tpu.memory_space<vmem>>, vector<32x32xf32>
    %cst = arith.constant dense<0.000000e+00> : vector<16x32xf32>
    %2 = tpu.matmul %0, %1, %cst {dimension_numbers = #tpu.dot_dimension_numbers<[1], [0], [0], [1], [0, 0, 1, 1], [], []>} : vector<16x32xf32>, vector<32x32xf32>, vector<16x32xf32> -> vector<16x32xf32>
    %c0_3 = arith.constant 0 : index
    %c0_4 = arith.constant 0 : index
    %3 = vector.load %arg3[%c0_3, %c0_4] : memref<1x32xf32, #tpu.memory_space<vmem>>, vector<1x32xf32>
    %4 = vector.broadcast %3 : vector<1x32xf32> to vector<16x32xf32>
    %5 = arith.addf %2, %4 : vector<16x32xf32>
    %6 = math.tanh %5 : vector<16x32xf32>
    %c0_5 = arith.constant 0 : index
    %c0_6 = arith.constant 0 : index
    %7 = vector.load %arg4[%c0_5, %c0_6] : memref<32x96xf32, #tpu.memory_space<vmem>>, vector<32x96xf32>
    %cst_7 = arith.constant dense<0.000000e+00> : vector<16x96xf32>
    %8 = tpu.matmul %6, %7, %cst_7 {dimension_numbers = #tpu.dot_dimension_numbers<[1], [0], [0], [1], [0, 0, 1, 1], [], []>} : vector<16x32xf32>, vector<32x96xf32>, vector<16x96xf32> -> vector<16x96xf32>
    %c0_8 = arith.constant 0 : index
    %c0_9 = arith.constant 0 : index
    %9 = vector.load %arg5[%c0_8, %c0_9] : memref<1x96xf32, #tpu.memory_space<vmem>>, vector<1x96xf32>
    %10 = vector.broadcast %9 : vector<1x96xf32> to vector<16x96xf32>
    %11 = arith.addf %8, %10 : vector<16x96xf32>
    %c0_10 = arith.constant 0 : index
    %c0_11 = arith.constant 0 : index
    %12 = vector.load %arg6[%c0_10, %c0_11] : memref<32x96xf32, #tpu.memory_space<vmem>>, vector<32x96xf32>
    %c0_12 = arith.constant 0 : index
    %c0_13 = arith.constant 0 : index
    %13 = vector.load %arg7[%c0_12, %c0_13] : memref<1x96xf32, #tpu.memory_space<vmem>>, vector<1x96xf32>
    %14 = vector.shape_cast %13 : vector<1x96xf32> to vector<1x96xf32>
    %15 = vector.broadcast %14 : vector<1x96xf32> to vector<2x96xf32>
    %c0_14 = arith.constant 0 : index
    %c0_15 = arith.constant 0 : index
    %16 = vector.load %arg1[%c0_14, %c0_15] : memref<2x32xf32, #tpu.memory_space<vmem>>, vector<2x32xf32>
    %17 = vector.extract_strided_slice %11 {offsets = [0, 0], sizes = [2, 96], strides = [1, 1]} : vector<16x96xf32> to vector<2x96xf32>
    %cst_16 = arith.constant dense<0.000000e+00> : vector<2x96xf32>
    %18 = tpu.matmul %16, %12, %cst_16 {dimension_numbers = #tpu.dot_dimension_numbers<[1], [0], [0], [1], [0, 0, 1, 1], [], []>} : vector<2x32xf32>, vector<32x96xf32>, vector<2x96xf32> -> vector<2x96xf32>
    %19 = arith.addf %18, %15 : vector<2x96xf32>
    %20 = vector.extract_strided_slice %17 {offsets = [0, 0], sizes = [2, 64], strides = [1, 1]} : vector<2x96xf32> to vector<2x64xf32>
    %21 = vector.extract_strided_slice %19 {offsets = [0, 0], sizes = [2, 64], strides = [1, 1]} : vector<2x96xf32> to vector<2x64xf32>
    %22 = arith.addf %20, %21 : vector<2x64xf32>
    %23 = arith.negf %22 : vector<2x64xf32>
    %24 = math.exp %23 : vector<2x64xf32>
    %cst_17 = arith.constant 1.000000e+00 : f32
    %25 = vector.broadcast %cst_17 : f32 to vector<2x64xf32>
    %26 = arith.addf %25, %24 : vector<2x64xf32>
    %27 = arith.divf %25, %26 : vector<2x64xf32>
    %28 = vector.extract_strided_slice %27 {offsets = [0, 0], sizes = [2, 32], strides = [1, 1]} : vector<2x64xf32> to vector<2x32xf32>
    %29 = vector.extract_strided_slice %27 {offsets = [0, 32], sizes = [2, 32], strides = [1, 1]} : vector<2x64xf32> to vector<2x32xf32>
    %30 = vector.extract_strided_slice %17 {offsets = [0, 64], sizes = [2, 32], strides = [1, 1]} : vector<2x96xf32> to vector<2x32xf32>
    %31 = vector.extract_strided_slice %19 {offsets = [0, 64], sizes = [2, 32], strides = [1, 1]} : vector<2x96xf32> to vector<2x32xf32>
    %32 = arith.mulf %28, %31 : vector<2x32xf32>
    %33 = arith.addf %30, %32 : vector<2x32xf32>
    %34 = math.tanh %33 : vector<2x32xf32>
    %35 = arith.subf %16, %34 : vector<2x32xf32>
    %36 = arith.mulf %29, %35 : vector<2x32xf32>
    %37 = arith.addf %34, %36 : vector<2x32xf32>
    %c0_18 = arith.constant 0 : index
    %c0_19 = arith.constant 0 : index
    %38 = vector.load %arg14[%c0_18, %c0_19] : memref<16x32xf32, #tpu.memory_space<vmem>>, vector<2x32xf32>
    tpu.vector_store %arg14[%c0_18, %c0_19], %37 {strides = array<i32>} : memref<16x32xf32, #tpu.memory_space<vmem>>, vector<2x32xf32>,
    %39 = vector.extract_strided_slice %11 {offsets = [2, 0], sizes = [2, 96], strides = [1, 1]} : vector<16x96xf32> to vector<2x96xf32>
    %cst_20 = arith.constant dense<0.000000e+00> : vector<2x96xf32>
    %40 = tpu.matmul %37, %12, %cst_20 {dimension_numbers = #tpu.dot_dimension_numbers<[1], [0], [0], [1], [0, 0, 1, 1], [], []>} : vector<2x32xf32>, vector<32x96xf32>, vector<2x96xf32> -> vector<2x96xf32>
    %41 = arith.addf %40, %15 : vector<2x96xf32>
    %42 = vector.extract_strided_slice %39 {offsets = [0, 0], sizes = [2, 64], strides = [1, 1]} : vector<2x96xf32> to vector<2x64xf32>
    %43 = vector.extract_strided_slice %41 {offsets = [0, 0], sizes = [2, 64], strides = [1, 1]} : vector<2x96xf32> to vector<2x64xf32>
    %44 = arith.addf %42, %43 : vector<2x64xf32>
    %45 = arith.negf %44 : vector<2x64xf32>
    %46 = math.exp %45 : vector<2x64xf32>
    %cst_21 = arith.constant 1.000000e+00 : f32
    %47 = vector.broadcast %cst_21 : f32 to vector<2x64xf32>
    %48 = arith.addf %47, %46 : vector<2x64xf32>
    %49 = arith.divf %47, %48 : vector<2x64xf32>
    %50 = vector.extract_strided_slice %49 {offsets = [0, 0], sizes = [2, 32], strides = [1, 1]} : vector<2x64xf32> to vector<2x32xf32>
    %51 = vector.extract_strided_slice %49 {offsets = [0, 32], sizes = [2, 32], strides = [1, 1]} : vector<2x64xf32> to vector<2x32xf32>
    %52 = vector.extract_strided_slice %39 {offsets = [0, 64], sizes = [2, 32], strides = [1, 1]} : vector<2x96xf32> to vector<2x32xf32>
    %53 = vector.extract_strided_slice %41 {offsets = [0, 64], sizes = [2, 32], strides = [1, 1]} : vector<2x96xf32> to vector<2x32xf32>
    %54 = arith.mulf %50, %53 : vector<2x32xf32>
    %55 = arith.addf %52, %54 : vector<2x32xf32>
    %56 = math.tanh %55 : vector<2x32xf32>
    %57 = arith.subf %37, %56 : vector<2x32xf32>
    %58 = arith.mulf %51, %57 : vector<2x32xf32>
    %59 = arith.addf %56, %58 : vector<2x32xf32>
    %c2 = arith.constant 2 : index
    %c0_22 = arith.constant 0 : index
    %60 = vector.load %arg14[%c2, %c0_22] : memref<16x32xf32, #tpu.memory_space<vmem>>, vector<2x32xf32>
    tpu.vector_store %arg14[%c2, %c0_22], %59 {strides = array<i32>} : memref<16x32xf32, #tpu.memory_space<vmem>>, vector<2x32xf32>,
    %61 = vector.extract_strided_slice %11 {offsets = [4, 0], sizes = [2, 96], strides = [1, 1]} : vector<16x96xf32> to vector<2x96xf32>
    %cst_23 = arith.constant dense<0.000000e+00> : vector<2x96xf32>
    %62 = tpu.matmul %59, %12, %cst_23 {dimension_numbers = #tpu.dot_dimension_numbers<[1], [0], [0], [1], [0, 0, 1, 1], [], []>} : vector<2x32xf32>, vector<32x96xf32>, vector<2x96xf32> -> vector<2x96xf32>
    %63 = arith.addf %62, %15 : vector<2x96xf32>
    %64 = vector.extract_strided_slice %61 {offsets = [0, 0], sizes = [2, 64], strides = [1, 1]} : vector<2x96xf32> to vector<2x64xf32>
    %65 = vector.extract_strided_slice %63 {offsets = [0, 0], sizes = [2, 64], strides = [1, 1]} : vector<2x96xf32> to vector<2x64xf32>
    %66 = arith.addf %64, %65 : vector<2x64xf32>
    %67 = arith.negf %66 : vector<2x64xf32>
    %68 = math.exp %67 : vector<2x64xf32>
    %cst_24 = arith.constant 1.000000e+00 : f32
    %69 = vector.broadcast %cst_24 : f32 to vector<2x64xf32>
    %70 = arith.addf %69, %68 : vector<2x64xf32>
    %71 = arith.divf %69, %70 : vector<2x64xf32>
    %72 = vector.extract_strided_slice %71 {offsets = [0, 0], sizes = [2, 32], strides = [1, 1]} : vector<2x64xf32> to vector<2x32xf32>
    %73 = vector.extract_strided_slice %71 {offsets = [0, 32], sizes = [2, 32], strides = [1, 1]} : vector<2x64xf32> to vector<2x32xf32>
    %74 = vector.extract_strided_slice %61 {offsets = [0, 64], sizes = [2, 32], strides = [1, 1]} : vector<2x96xf32> to vector<2x32xf32>
    %75 = vector.extract_strided_slice %63 {offsets = [0, 64], sizes = [2, 32], strides = [1, 1]} : vector<2x96xf32> to vector<2x32xf32>
    %76 = arith.mulf %72, %75 : vector<2x32xf32>
    %77 = arith.addf %74, %76 : vector<2x32xf32>
    %78 = math.tanh %77 : vector<2x32xf32>
    %79 = arith.subf %59, %78 : vector<2x32xf32>
    %80 = arith.mulf %73, %79 : vector<2x32xf32>
    %81 = arith.addf %78, %80 : vector<2x32xf32>
    %c4 = arith.constant 4 : index
    %c0_25 = arith.constant 0 : index
    %82 = vector.load %arg14[%c4, %c0_25] : memref<16x32xf32, #tpu.memory_space<vmem>>, vector<2x32xf32>
    tpu.vector_store %arg14[%c4, %c0_25], %81 {strides = array<i32>} : memref<16x32xf32, #tpu.memory_space<vmem>>, vector<2x32xf32>,
    %83 = vector.extract_strided_slice %11 {offsets = [6, 0], sizes = [2, 96], strides = [1, 1]} : vector<16x96xf32> to vector<2x96xf32>
    %cst_26 = arith.constant dense<0.000000e+00> : vector<2x96xf32>
    %84 = tpu.matmul %81, %12, %cst_26 {dimension_numbers = #tpu.dot_dimension_numbers<[1], [0], [0], [1], [0, 0, 1, 1], [], []>} : vector<2x32xf32>, vector<32x96xf32>, vector<2x96xf32> -> vector<2x96xf32>
    %85 = arith.addf %84, %15 : vector<2x96xf32>
    %86 = vector.extract_strided_slice %83 {offsets = [0, 0], sizes = [2, 64], strides = [1, 1]} : vector<2x96xf32> to vector<2x64xf32>
    %87 = vector.extract_strided_slice %85 {offsets = [0, 0], sizes = [2, 64], strides = [1, 1]} : vector<2x96xf32> to vector<2x64xf32>
    %88 = arith.addf %86, %87 : vector<2x64xf32>
    %89 = arith.negf %88 : vector<2x64xf32>
    %90 = math.exp %89 : vector<2x64xf32>
    %cst_27 = arith.constant 1.000000e+00 : f32
    %91 = vector.broadcast %cst_27 : f32 to vector<2x64xf32>
    %92 = arith.addf %91, %90 : vector<2x64xf32>
    %93 = arith.divf %91, %92 : vector<2x64xf32>
    %94 = vector.extract_strided_slice %93 {offsets = [0, 0], sizes = [2, 32], strides = [1, 1]} : vector<2x64xf32> to vector<2x32xf32>
    %95 = vector.extract_strided_slice %93 {offsets = [0, 32], sizes = [2, 32], strides = [1, 1]} : vector<2x64xf32> to vector<2x32xf32>
    %96 = vector.extract_strided_slice %83 {offsets = [0, 64], sizes = [2, 32], strides = [1, 1]} : vector<2x96xf32> to vector<2x32xf32>
    %97 = vector.extract_strided_slice %85 {offsets = [0, 64], sizes = [2, 32], strides = [1, 1]} : vector<2x96xf32> to vector<2x32xf32>
    %98 = arith.mulf %94, %97 : vector<2x32xf32>
    %99 = arith.addf %96, %98 : vector<2x32xf32>
    %100 = math.tanh %99 : vector<2x32xf32>
    %101 = arith.subf %81, %100 : vector<2x32xf32>
    %102 = arith.mulf %95, %101 : vector<2x32xf32>
    %103 = arith.addf %100, %102 : vector<2x32xf32>
    %c6 = arith.constant 6 : index
    %c0_28 = arith.constant 0 : index
    %104 = vector.load %arg14[%c6, %c0_28] : memref<16x32xf32, #tpu.memory_space<vmem>>, vector<2x32xf32>
    tpu.vector_store %arg14[%c6, %c0_28], %103 {strides = array<i32>} : memref<16x32xf32, #tpu.memory_space<vmem>>, vector<2x32xf32>,
    %105 = vector.extract_strided_slice %11 {offsets = [8, 0], sizes = [2, 96], strides = [1, 1]} : vector<16x96xf32> to vector<2x96xf32>
    %cst_29 = arith.constant dense<0.000000e+00> : vector<2x96xf32>
    %106 = tpu.matmul %103, %12, %cst_29 {dimension_numbers = #tpu.dot_dimension_numbers<[1], [0], [0], [1], [0, 0, 1, 1], [], []>} : vector<2x32xf32>, vector<32x96xf32>, vector<2x96xf32> -> vector<2x96xf32>
    %107 = arith.addf %106, %15 : vector<2x96xf32>
    %108 = vector.extract_strided_slice %105 {offsets = [0, 0], sizes = [2, 64], strides = [1, 1]} : vector<2x96xf32> to vector<2x64xf32>
    %109 = vector.extract_strided_slice %107 {offsets = [0, 0], sizes = [2, 64], strides = [1, 1]} : vector<2x96xf32> to vector<2x64xf32>
    %110 = arith.addf %108, %109 : vector<2x64xf32>
    %111 = arith.negf %110 : vector<2x64xf32>
    %112 = math.exp %111 : vector<2x64xf32>
    %cst_30 = arith.constant 1.000000e+00 : f32
    %113 = vector.broadcast %cst_30 : f32 to vector<2x64xf32>
    %114 = arith.addf %113, %112 : vector<2x64xf32>
    %115 = arith.divf %113, %114 : vector<2x64xf32>
    %116 = vector.extract_strided_slice %115 {offsets = [0, 0], sizes = [2, 32], strides = [1, 1]} : vector<2x64xf32> to vector<2x32xf32>
    %117 = vector.extract_strided_slice %115 {offsets = [0, 32], sizes = [2, 32], strides = [1, 1]} : vector<2x64xf32> to vector<2x32xf32>
    %118 = vector.extract_strided_slice %105 {offsets = [0, 64], sizes = [2, 32], strides = [1, 1]} : vector<2x96xf32> to vector<2x32xf32>
    %119 = vector.extract_strided_slice %107 {offsets = [0, 64], sizes = [2, 32], strides = [1, 1]} : vector<2x96xf32> to vector<2x32xf32>
    %120 = arith.mulf %116, %119 : vector<2x32xf32>
    %121 = arith.addf %118, %120 : vector<2x32xf32>
    %122 = math.tanh %121 : vector<2x32xf32>
    %123 = arith.subf %103, %122 : vector<2x32xf32>
    %124 = arith.mulf %117, %123 : vector<2x32xf32>
    %125 = arith.addf %122, %124 : vector<2x32xf32>
    %c8 = arith.constant 8 : index
    %c0_31 = arith.constant 0 : index
    %126 = vector.load %arg14[%c8, %c0_31] : memref<16x32xf32, #tpu.memory_space<vmem>>, vector<2x32xf32>
    tpu.vector_store %arg14[%c8, %c0_31], %125 {strides = array<i32>} : memref<16x32xf32, #tpu.memory_space<vmem>>, vector<2x32xf32>,
    %127 = vector.extract_strided_slice %11 {offsets = [10, 0], sizes = [2, 96], strides = [1, 1]} : vector<16x96xf32> to vector<2x96xf32>
    %cst_32 = arith.constant dense<0.000000e+00> : vector<2x96xf32>
    %128 = tpu.matmul %125, %12, %cst_32 {dimension_numbers = #tpu.dot_dimension_numbers<[1], [0], [0], [1], [0, 0, 1, 1], [], []>} : vector<2x32xf32>, vector<32x96xf32>, vector<2x96xf32> -> vector<2x96xf32>
    %129 = arith.addf %128, %15 : vector<2x96xf32>
    %130 = vector.extract_strided_slice %127 {offsets = [0, 0], sizes = [2, 64], strides = [1, 1]} : vector<2x96xf32> to vector<2x64xf32>
    %131 = vector.extract_strided_slice %129 {offsets = [0, 0], sizes = [2, 64], strides = [1, 1]} : vector<2x96xf32> to vector<2x64xf32>
    %132 = arith.addf %130, %131 : vector<2x64xf32>
    %133 = arith.negf %132 : vector<2x64xf32>
    %134 = math.exp %133 : vector<2x64xf32>
    %cst_33 = arith.constant 1.000000e+00 : f32
    %135 = vector.broadcast %cst_33 : f32 to vector<2x64xf32>
    %136 = arith.addf %135, %134 : vector<2x64xf32>
    %137 = arith.divf %135, %136 : vector<2x64xf32>
    %138 = vector.extract_strided_slice %137 {offsets = [0, 0], sizes = [2, 32], strides = [1, 1]} : vector<2x64xf32> to vector<2x32xf32>
    %139 = vector.extract_strided_slice %137 {offsets = [0, 32], sizes = [2, 32], strides = [1, 1]} : vector<2x64xf32> to vector<2x32xf32>
    %140 = vector.extract_strided_slice %127 {offsets = [0, 64], sizes = [2, 32], strides = [1, 1]} : vector<2x96xf32> to vector<2x32xf32>
    %141 = vector.extract_strided_slice %129 {offsets = [0, 64], sizes = [2, 32], strides = [1, 1]} : vector<2x96xf32> to vector<2x32xf32>
    %142 = arith.mulf %138, %141 : vector<2x32xf32>
    %143 = arith.addf %140, %142 : vector<2x32xf32>
    %144 = math.tanh %143 : vector<2x32xf32>
    %145 = arith.subf %125, %144 : vector<2x32xf32>
    %146 = arith.mulf %139, %145 : vector<2x32xf32>
    %147 = arith.addf %144, %146 : vector<2x32xf32>
    %c10 = arith.constant 10 : index
    %c0_34 = arith.constant 0 : index
    %148 = vector.load %arg14[%c10, %c0_34] : memref<16x32xf32, #tpu.memory_space<vmem>>, vector<2x32xf32>
    tpu.vector_store %arg14[%c10, %c0_34], %147 {strides = array<i32>} : memref<16x32xf32, #tpu.memory_space<vmem>>, vector<2x32xf32>,
    %149 = vector.extract_strided_slice %11 {offsets = [12, 0], sizes = [2, 96], strides = [1, 1]} : vector<16x96xf32> to vector<2x96xf32>
    %cst_35 = arith.constant dense<0.000000e+00> : vector<2x96xf32>
    %150 = tpu.matmul %147, %12, %cst_35 {dimension_numbers = #tpu.dot_dimension_numbers<[1], [0], [0], [1], [0, 0, 1, 1], [], []>} : vector<2x32xf32>, vector<32x96xf32>, vector<2x96xf32> -> vector<2x96xf32>
    %151 = arith.addf %150, %15 : vector<2x96xf32>
    %152 = vector.extract_strided_slice %149 {offsets = [0, 0], sizes = [2, 64], strides = [1, 1]} : vector<2x96xf32> to vector<2x64xf32>
    %153 = vector.extract_strided_slice %151 {offsets = [0, 0], sizes = [2, 64], strides = [1, 1]} : vector<2x96xf32> to vector<2x64xf32>
    %154 = arith.addf %152, %153 : vector<2x64xf32>
    %155 = arith.negf %154 : vector<2x64xf32>
    %156 = math.exp %155 : vector<2x64xf32>
    %cst_36 = arith.constant 1.000000e+00 : f32
    %157 = vector.broadcast %cst_36 : f32 to vector<2x64xf32>
    %158 = arith.addf %157, %156 : vector<2x64xf32>
    %159 = arith.divf %157, %158 : vector<2x64xf32>
    %160 = vector.extract_strided_slice %159 {offsets = [0, 0], sizes = [2, 32], strides = [1, 1]} : vector<2x64xf32> to vector<2x32xf32>
    %161 = vector.extract_strided_slice %159 {offsets = [0, 32], sizes = [2, 32], strides = [1, 1]} : vector<2x64xf32> to vector<2x32xf32>
    %162 = vector.extract_strided_slice %149 {offsets = [0, 64], sizes = [2, 32], strides = [1, 1]} : vector<2x96xf32> to vector<2x32xf32>
    %163 = vector.extract_strided_slice %151 {offsets = [0, 64], sizes = [2, 32], strides = [1, 1]} : vector<2x96xf32> to vector<2x32xf32>
    %164 = arith.mulf %160, %163 : vector<2x32xf32>
    %165 = arith.addf %162, %164 : vector<2x32xf32>
    %166 = math.tanh %165 : vector<2x32xf32>
    %167 = arith.subf %147, %166 : vector<2x32xf32>
    %168 = arith.mulf %161, %167 : vector<2x32xf32>
    %169 = arith.addf %166, %168 : vector<2x32xf32>
    %c12 = arith.constant 12 : index
    %c0_37 = arith.constant 0 : index
    %170 = vector.load %arg14[%c12, %c0_37] : memref<16x32xf32, #tpu.memory_space<vmem>>, vector<2x32xf32>
    tpu.vector_store %arg14[%c12, %c0_37], %169 {strides = array<i32>} : memref<16x32xf32, #tpu.memory_space<vmem>>, vector<2x32xf32>,
    %171 = vector.extract_strided_slice %11 {offsets = [14, 0], sizes = [2, 96], strides = [1, 1]} : vector<16x96xf32> to vector<2x96xf32>
    %cst_38 = arith.constant dense<0.000000e+00> : vector<2x96xf32>
    %172 = tpu.matmul %169, %12, %cst_38 {dimension_numbers = #tpu.dot_dimension_numbers<[1], [0], [0], [1], [0, 0, 1, 1], [], []>} : vector<2x32xf32>, vector<32x96xf32>, vector<2x96xf32> -> vector<2x96xf32>
    %173 = arith.addf %172, %15 : vector<2x96xf32>
    %174 = vector.extract_strided_slice %171 {offsets = [0, 0], sizes = [2, 64], strides = [1, 1]} : vector<2x96xf32> to vector<2x64xf32>
    %175 = vector.extract_strided_slice %173 {offsets = [0, 0], sizes = [2, 64], strides = [1, 1]} : vector<2x96xf32> to vector<2x64xf32>
    %176 = arith.addf %174, %175 : vector<2x64xf32>
    %177 = arith.negf %176 : vector<2x64xf32>
    %178 = math.exp %177 : vector<2x64xf32>
    %cst_39 = arith.constant 1.000000e+00 : f32
    %179 = vector.broadcast %cst_39 : f32 to vector<2x64xf32>
    %180 = arith.addf %179, %178 : vector<2x64xf32>
    %181 = arith.divf %179, %180 : vector<2x64xf32>
    %182 = vector.extract_strided_slice %181 {offsets = [0, 0], sizes = [2, 32], strides = [1, 1]} : vector<2x64xf32> to vector<2x32xf32>
    %183 = vector.extract_strided_slice %181 {offsets = [0, 32], sizes = [2, 32], strides = [1, 1]} : vector<2x64xf32> to vector<2x32xf32>
    %184 = vector.extract_strided_slice %171 {offsets = [0, 64], sizes = [2, 32], strides = [1, 1]} : vector<2x96xf32> to vector<2x32xf32>
    %185 = vector.extract_strided_slice %173 {offsets = [0, 64], sizes = [2, 32], strides = [1, 1]} : vector<2x96xf32> to vector<2x32xf32>
    %186 = arith.mulf %182, %185 : vector<2x32xf32>
    %187 = arith.addf %184, %186 : vector<2x32xf32>
    %188 = math.tanh %187 : vector<2x32xf32>
    %189 = arith.subf %169, %188 : vector<2x32xf32>
    %190 = arith.mulf %183, %189 : vector<2x32xf32>
    %191 = arith.addf %188, %190 : vector<2x32xf32>
    %c14 = arith.constant 14 : index
    %c0_40 = arith.constant 0 : index
    %192 = vector.load %arg14[%c14, %c0_40] : memref<16x32xf32, #tpu.memory_space<vmem>>, vector<2x32xf32>
    tpu.vector_store %arg14[%c14, %c0_40], %191 {strides = array<i32>} : memref<16x32xf32, #tpu.memory_space<vmem>>, vector<2x32xf32>,
    %c0_41 = arith.constant 0 : index
    %c0_42 = arith.constant 0 : index
    %193 = vector.load %arg13[%c0_41, %c0_42] : memref<2x32xf32, #tpu.memory_space<vmem>>, vector<2x32xf32>
    tpu.vector_store %arg13[%c0_41, %c0_42], %191 {strides = array<i32>} : memref<2x32xf32, #tpu.memory_space<vmem>>, vector<2x32xf32>,
    %c0_43 = arith.constant 0 : index
    %c0_44 = arith.constant 0 : index
    %194 = vector.load %arg14[%c0_43, %c0_44] : memref<16x32xf32, #tpu.memory_space<vmem>>, vector<16x32xf32>
    %c0_45 = arith.constant 0 : index
    %c0_46 = arith.constant 0 : index
    %195 = vector.load %arg8[%c0_45, %c0_46] : memref<32x32xf32, #tpu.memory_space<vmem>>, vector<32x32xf32>
    %cst_47 = arith.constant dense<0.000000e+00> : vector<16x32xf32>
    %196 = tpu.matmul %194, %195, %cst_47 {dimension_numbers = #tpu.dot_dimension_numbers<[1], [0], [0], [1], [0, 0, 1, 1], [], []>} : vector<16x32xf32>, vector<32x32xf32>, vector<16x32xf32> -> vector<16x32xf32>
    %c0_48 = arith.constant 0 : index
    %c0_49 = arith.constant 0 : index
    %197 = vector.load %arg9[%c0_48, %c0_49] : memref<1x32xf32, #tpu.memory_space<vmem>>, vector<1x32xf32>
    %198 = vector.broadcast %197 : vector<1x32xf32> to vector<16x32xf32>
    %199 = arith.addf %196, %198 : vector<16x32xf32>
    %200 = math.tanh %199 : vector<16x32xf32>
    %c0_50 = arith.constant 0 : index
    %c0_51 = arith.constant 0 : index
    %201 = vector.load %arg10[%c0_50, %c0_51] : memref<32x128xf32, #tpu.memory_space<vmem>>, vector<32x128xf32>
    %cst_52 = arith.constant dense<0.000000e+00> : vector<16x128xf32>
    %202 = tpu.matmul %200, %201, %cst_52 {dimension_numbers = #tpu.dot_dimension_numbers<[1], [0], [0], [1], [0, 0, 1, 1], [], []>} : vector<16x32xf32>, vector<32x128xf32>, vector<16x128xf32> -> vector<16x128xf32>
    %c0_53 = arith.constant 0 : index
    %c0_54 = arith.constant 0 : index
    %203 = vector.load %arg11[%c0_53, %c0_54] : memref<1x128xf32, #tpu.memory_space<vmem>>, vector<1x128xf32>
    %204 = vector.broadcast %203 : vector<1x128xf32> to vector<16x128xf32>
    %205 = arith.addf %202, %204 : vector<16x128xf32>
    %cst_55 = arith.constant dense<0xFF800000> : vector<16xf32>
    %206 = vector.multi_reduction <maximumf>, %205, %cst_55 [1] : vector<16x128xf32> to vector<16xf32>
    %207 = vector.shape_cast %206 : vector<16xf32> to vector<16x1xf32>
    %208 = vector.broadcast %207 : vector<16x1xf32> to vector<16x128xf32>
    %209 = arith.subf %205, %208 : vector<16x128xf32>
    %210 = math.exp %209 : vector<16x128xf32>
    %cst_56 = arith.constant dense<0.000000e+00> : vector<16xf32>
    %211 = vector.multi_reduction <add>, %210, %cst_56 [1] : vector<16x128xf32> to vector<16xf32>
    %212 = vector.shape_cast %211 : vector<16xf32> to vector<16x1xf32>
    %213 = vector.broadcast %212 : vector<16x1xf32> to vector<16x128xf32>
    %214 = arith.divf %210, %213 : vector<16x128xf32>
    %c0_57 = arith.constant 0 : index
    %c0_58 = arith.constant 0 : index
    %215 = vector.load %arg12[%c0_57, %c0_58] : memref<16x128xf32, #tpu.memory_space<vmem>>, vector<16x128xf32>
    tpu.vector_store %arg12[%c0_57, %c0_58], %214 {strides = array<i32>} : memref<16x128xf32, #tpu.memory_space<vmem>>, vector<16x128xf32>,
    return
  }
}

</mosaic_0001>

<bundles_post_ra>
// kernel: rec_softmax_actor_forward.1
= control target key start
LH: loop header
LB: loop body
LE: loop exit
PB: predicated region body
PF: predicated region fallthrough
CT: control target
= control target key end

     0   :  { %vm57_vm0 = vcmask 261120   ;;  %s2140_s0 = inlined_call_operand.vmem [shape: f32[16,32], index: 0, kind: input, shape index: {}]   ;;  %s2141_s1 = inlined_call_operand.vmem [shape: f32[2,32], index: 1, kind: input, shape index: {}]   ;;  %s2142_s2 = inlined_call_operand.vmem [shape: f32[32,32], index: 2, kind: input, shape index: {}]   ;;  %s2143_s3 = inlined_call_operand.vmem [shape: f32[1,32], index: 3, kind: input, shape index: {}]   ;;  %s2144_s4 = inlined_call_operand.vmem [shape: f32[32,96], index: 4, kind: input, shape index: {}]   ;;  %s2145_s5 = inlined_call_operand.vmem [shape: f32[1,96], index: 5, kind: input, shape index: {}]   ;;  %s2146_s6 = inlined_call_operand.vmem [shape: f32[32,96], index: 6, kind: input, shape index: {}]   ;;  %s2147_s7 = inlined_call_operand.vmem [shape: f32[1,96], index: 7, kind: input, shape index: {}]   ;;  %s2148_s8 = inlined_call_operand.vmem [shape: f32[32,32], index: 8, kind: input, shape index: {}]   ;;  %s2149_s9 = inlined_call_operand.vmem [shape: f32[1,32], index: 9, kind: input, shape index: {}]   ;;  %s2150_s10 = inlined_call_operand.vmem [shape: f32[32,128], index: 10, kind: input, shape index: {}]   ;;  %s2151_s11 = inlined_call_operand.vmem [shape: f32[1,128], index: 11, kind: input, shape index: {}]   ;;  %s2152_s12 = inlined_call_operand.vmem [shape: f32[16,128], index: 12, kind: output, shape index: {0}]   ;;  %s2153_s13 = inlined_call_operand.hbm [shape: f32[2,32], index: 13, kind: output, shape index: {1}]  }
   0x1   :  { %v46_v0 = vld [vmem:[%s2142_s2] sm:$0xff]  ;;  %v47_v1 = vld [vmem:[%s2142_s2 + $0x8] sm:$0xff]  ;;  %v48_v2 = vld [vmem:[%s2142_s2 + $0x10] sm:$0xff] }
   0x2   :  { %v1609_v3 = vpack.c.bf16 %v47_v1, %v46_v0  ;;  %v49_v4 = vld [vmem:[%s2142_s2 + $0x18] sm:$0xff]  ;;  %v44_v5 = vld [vmem:[%s2140_s0] sm:$0xff] }
   0x3   :  { %v1613_v6 = vpack.c.bf16 %v49_v4, %v48_v2  ;;  %1485 = vmatprep.mubr.msk.f32.mxu0 %vm57_vm0, %v44_v5 }
   0x4   :  { %1610 = vmatprep.subr.bf16.mxu0 %v1609_v3 }
   0x5   :  { %19 = vsyncpa [#allocation4], 0  ;;  %1612 = vmatpush3.bf16.msra.mxu0 %v1609_v3  ;;  %v233_v7 = vld [vmem:[%s2146_s6] sm:$0xff]  ;;  %v234_v8 = vld [vmem:[%s2146_s6 + $0x8] sm:$0xff]  ;;  %v1784_v11 = vmov 0.0|0.0   ;;  %vm1785_vm1 = vmmov 0  }
   0x6   :  { %1614 = vmatprep.subr.bf16.mxu0 %v1613_v6  ;;  %v45_v9 = vld [vmem:[%s2140_s0 + $0x8] sm:$0xff]  ;;  %v1886_v10 = vpack.c.bf16 %v234_v8, %v233_v7  ;;  %v235_v12 = vld [vmem:[%s2146_s6 + $0x10] sm:$0xff]  ;;  %v236_v13 = vld [vmem:[%s2146_s6 + $0x18] sm:$0xff]  ;;  %v1786_v15 = vmov 0.0   ;;  %vm355_vm2 = vcmask 254976   ;;  %s1789_s21 = smov 96  }
   0x7   :  { %v1897_v14 = vpack.c.bf16 %v236_v13, %v235_v12  ;;  %v1906_v16 = vld [vmem:[%s2141_s1] sm:$0x3]  ;;  %v142_v18 = vld [vmem:[%s2144_s4 + $0x8] sm:$0xff]  ;;  %v143_v19 = vld [vmem:[%s2144_s4 + $0x10] sm:$0xff]  ;;  %vm468_vm3 = vcmask 257026   ;;  %vm700_vm4 = vcmask 261126  }
   0x8   :  { %v141_v17 = vld [vmem:[%s2144_s4] sm:$0xff]  ;;  %v144_v21 = vld [vmem:[%s2144_s4 + $0x18] sm:$0xff]  ;;  %s1787_s4 = smov 64   ;;  %vm584_vm5 = vcmask 259076  }
   0x9   :  { %1616 = vmatpush3.bf16.msra.mxu0 %v1613_v6  ;;  %v1617_v20 = vpack.c.bf16 %v142_v18, %v141_v17  ;;  %v1621_v22 = vpack.c.bf16 %v144_v21, %v143_v19  ;;  %v1384_v23 = vld [vmem:[%s2143_s3] ss:$0 sm:$0xff] }
   0xa   :  { %1625 = vmatprep.subr.bf16.mxu0 %v1784_v11  ;;  %v1936_v28 = vld [vmem:[%s2147_s7] ss:$0 sm:$0xff] }
   0xb   :  { %1618 = vmatprep.subr.bf16.mxu1 %v1617_v20  ;;  %v1387_v34 = vld [vmem:[%s2145_s5] ss:$0 sm:$0xff]  ;;  %s1788_s5 = smov 32  }
   0xc   :  { %1486 = vmatmul.mubr.msk.f32.vlgmr.msra.gmra.mrb[0].mxu0 %vm57_vm0, %v45_v9  ;;  %1620 = vmatpush3.bf16.msra.mxu1 %v1617_v20 }
   0xd   :  { %1627 = vmatpush3.bf16.msra.mxu0 %v1886_v10  ;;  %1507 = vmatprep.mubr.msk.f32.mxu0 %vm1785_vm1, %v1786_v15 }
   0xe   :  { %1628 = vmatprep.subr.bf16.mxu0 %v1784_v11  ;;  %1622 = vmatprep.subr.bf16.mxu1 %v1621_v22 }
  0x10   :  { %1624 = vmatpush3.bf16.msra.mxu1 %v1621_v22 }
  0x11   :  { %1630 = vmatpush3.bf16.msra.mxu0 %v1897_v14  ;;  %1631 = vmatprep.subr.bf16.mxu1 %v1784_v11 }
  0x12   :  { %1637 = vmatprep.subr.bf16.mxu0 %v1784_v11 }
  0x14   :  { %1508 = vmatmul.mubr.msk.f32.vlgmr.msra.gmra.mrb[2].mxu0 %vm57_vm0, %v1906_v16 }
  0x15   :  { %1639 = vmatpush3.bf16.msra.mxu0 %v1886_v10  ;;  %1529 = vmatprep.mubr.msk.f32.mxu0 %vm1785_vm1, %v1786_v15 }
  0x16   :  { %1640 = vmatprep.subr.bf16.mxu0 %v1784_v11 }
  0x19   :  { %1642 = vmatpush3.bf16.msra.mxu0 %v1897_v14 }
  0x1a   :  { %1649 = vmatprep.subr.bf16.mxu0 %v1784_v11 }
  0xdf   :  { %v1487_v24 = vpop.f32.mrb[0].mxu0 }
  0xe0   :  { %v136_v25 = vadd.f32 %v1487_v24, %v1384_v23  ;;  %v130_v26 = vpop.f32.mrb[1].mxu0 }
  0xe1   :  { %v131_v27 = vadd.f32 %v1384_v23, %v130_v26 }
  0xe3   :  { %1696 = vtanh.f32 %v131_v27 }
  0xe4   :  { %1698 = vtanh.f32 %v136_v25 }
  0xe7   :  { %v314_v29 = vpop.f32.mrb[2].mxu0 }
  0xe8   :  { %v315_v30 = vadd.f32 %v1936_v28, %v314_v29  ;;  %v1509_v31 = vpop.f32.mrb[3].mxu0 }
  0xea   :  { %326 = vrot.lane.b32.xlu0 %v315_v30, %s1787_s4 }
  0xed   :  { %v1697_v32 = vpop.eup %1696 }
  0xee   :  { %v1699_v33 = vpop.eup %1698  ;;  %1496 = vmatprep.mubr.msk.f32.mxu1 %vm57_vm0, %v1697_v32 }
  0xef   :  { %1497 = vmatmul.mubr.msk.f32.vlgmr.msra.gmra.mrb[0].mxu1 %vm57_vm0, %v1699_v33 }
  0xf0   :  { %1633 = vmatpush3.bf16.msra.mxu1 %v1886_v10  ;;  %1518 = vmatprep.mubr.msk.f32.mxu1 %vm1785_vm1, %v1786_v15 }
  0xf1   :  { %1634 = vmatprep.subr.bf16.mxu1 %v1784_v11 }
  0xf4   :  { %1636 = vmatpush3.bf16.msra.mxu1 %v1897_v14 }
  0xf5   :  { %1643 = vmatprep.subr.bf16.mxu1 %v1784_v11 }
 0x15c   :  { %v327_v43 = vpop.permute.xlu0 %326 }
 0x1c2   :  { %v1498_v35 = vpop.f32.mrb[0].mxu1 }
 0x1c3   :  { %v1951_v36 = vadd.f32 %v1498_v35, %v1387_v34  ;;  %v224_v37 = vpop.f32.mrb[1].mxu1 }
 0x1c4   :  { %v1953_v38 = vadd.f32 %v1387_v34, %v224_v37 }
 0x1c6   :  { %v318_v39 = vadd.f32 %v315_v30, %v1953_v38 }
 0x1c8   :  { %v1392_v40 = vmul.f32 -1.442695, %v318_v39 }
 0x1ca   :  { %1700 = vpow2.f32 %v1392_v40 }
 0x1d4   :  { %v1701_v41 = vpop.eup %1700 }
 0x1d5   :  { %v322_v42 = vadd.f32 1.0, %v1701_v41 }
 0x1d7   :  { %1702 = vrcp.f32 %v322_v42 }
 0x1e1   :  { %v1703_v44 = vpop.eup %1702 }
 0x1e2   :  { %v329_v45 = vmul.f32 %v1703_v44, %v327_v43 }
 0x1e4   :  { %331 = vrot.lane.b32.xlu0 %v329_v45, %s1787_s4 }
 0x256   :  { %v332_v46 = vpop.permute.xlu0 %331 }
 0x257   :  { %v334_v47 = vadd.f32 %v332_v46, %v1953_v38 }
 0x259   :  { %1704 = vtanh.f32 %v334_v47 }
 0x263   :  { %v1705_v48 = vpop.eup %1704 }
 0x264   :  { %337 = vrot.lane.b32.xlu1 %v1705_v48, %s1787_s4 }
 0x2d6   :  { %v338_v49 = vpop.permute.xlu1 %337 }
 0x2d7   :  { %v340_v50 = vsub.f32 %v1906_v16, %v338_v49 }
 0x2d9   :  { %342 = vrot.lane.b32.xlu1 %v340_v50, %s1788_s5 }
 0x34b   :  { %v343_v51 = vpop.permute.xlu1 %342 }
 0x34c   :  { %v345_v52 = vmul.f32 %v1703_v44, %v343_v51 }
 0x34e   :  { %347 = vrot.lane.b32.xlu0 %v345_v52, %s1788_s5 }
 0x3c0   :  { %v348_v53 = vpop.permute.xlu0 %347 }
 0x3c1   :  { %v350_v54 = vadd.f32 %v1705_v48, %v348_v53 }
 0x3c3   :  { %352 = vrot.lane.b32.xlu1 %v350_v54, %s1787_s4 }
 0x435   :  { %v353_v55 = vpop.permute.xlu1 %352 }
 0x436   :  { %356 = vst.msk [vmem:[#allocation2] sm:$0x3] %vm355_vm2, %v353_v55  ;;  %1519 = vmatmul.mubr.msk.f32.vlgmr.msra.gmra.mrb[2].mxu1 %vm57_vm0, %v353_v55 }
 0x437   :  { %1645 = vmatpush3.bf16.msra.mxu1 %v1886_v10  ;;  %1540 = vmatprep.mubr.msk.f32.mxu1 %vm1785_vm1, %v1786_v15 }
 0x438   :  { %1646 = vmatprep.subr.bf16.mxu1 %v1784_v11 }
 0x43b   :  { %1648 = vmatpush3.bf16.msra.mxu1 %v1897_v14 }
 0x43c   :  { %1655 = vmatprep.subr.bf16.mxu1 %v1784_v11 }
 0x509   :  { %v425_v56 = vpop.f32.mrb[2].mxu1 }
 0x50a   :  { %v426_v57 = vadd.f32 %v1936_v28, %v425_v56  ;;  %v1520_v58 = vpop.f32.mrb[3].mxu1 }
 0x50c   :  { %v430_v59 = vrot.slane %v426_v57, 6 }
 0x50e   :  { %439 = vrot.lane.b32.xlu0 %v430_v59, %s1787_s4  ;;  %v432_v60 = vadd.f32 %v430_v59, %v1953_v38 }
 0x510   :  { %v1394_v61 = vmul.f32 -1.442695, %v432_v60 }
 0x512   :  { %1706 = vpow2.f32 %v1394_v61 }
 0x51c   :  { %v1707_v62 = vpop.eup %1706 }
 0x51d   :  { %v436_v63 = vadd.f32 1.0, %v1707_v62 }
 0x51f   :  { %1708 = vrcp.f32 %v436_v63 }
 0x529   :  { %v1709_v0 = vpop.eup %1708 }
 0x580   :  { %v440_v1 = vpop.permute.xlu0 %439 }
 0x581   :  { %v442_v2 = vmul.f32 %v1709_v0, %v440_v1 }
 0x583   :  { %444 = vrot.lane.b32.xlu1 %v442_v2, %s1787_s4 }
 0x5f5   :  { %v445_v3 = vpop.permute.xlu1 %444 }
 0x5f6   :  { %v447_v4 = vadd.f32 %v445_v3, %v1953_v38 }
 0x5f8   :  { %1710 = vtanh.f32 %v447_v4 }
 0x602   :  { %v1711_v5 = vpop.eup %1710 }
 0x603   :  { %v450_v6 = vrot.slane %v1711_v5, 2 }
 0x605   :  { %v452_v7 = vsub.f32 %v350_v54, %v450_v6 }
 0x607   :  { %v454_v8 = vrot.slane %v452_v7, 6 }
 0x609   :  { %455 = vrot.lane.b32.xlu0 %v454_v8, %s1789_s21 }
 0x67b   :  { %v456_v9 = vpop.permute.xlu0 %455 }
 0x67c   :  { %v458_v12 = vmul.f32 %v1709_v0, %v456_v9 }
 0x67e   :  { %460 = vrot.lane.b32.xlu1 %v458_v12, %s1788_s5 }
 0x6f0   :  { %v461_v13 = vpop.permute.xlu1 %460 }
 0x6f1   :  { %v1978_v16 = vadd.f32 %v1711_v5, %v461_v13 }
 0x6f3   :  { %v470_v17 = vrot.slane %v1978_v16, 2 }
 0x6f5   :  { %471 = vrot.lane.b32.xlu0 %v470_v17, %s1787_s4 }
 0x767   :  { %v472_v18 = vpop.permute.xlu0 %471 }
 0x768   :  { %1530 = vmatmul.mubr.msk.f32.vlgmr.msra.gmra.mrb[4].mxu0 %vm57_vm0, %v472_v18 }
 0x769   :  { %1651 = vmatpush3.bf16.msra.mxu0 %v1886_v10  ;;  %1551 = vmatprep.mubr.msk.f32.mxu0 %vm1785_vm1, %v1786_v15 }
 0x76a   :  { %1652 = vmatprep.subr.bf16.mxu0 %v1784_v11 }
 0x76d   :  { %1654 = vmatpush3.bf16.msra.mxu0 %v1897_v14 }
 0x76e   :  { %1661 = vmatprep.subr.bf16.mxu0 %v1784_v11 }
 0x83b   :  { %v541_v19 = vpop.f32.mrb[4].mxu0 }
 0x83c   :  { %v542_v20 = vadd.f32 %v1936_v28, %v541_v19  ;;  %v1531_v21 = vpop.f32.mrb[5].mxu0 }
 0x83e   :  { %v546_v22 = vrot.slane %v542_v20, 4 }
 0x840   :  { %555 = vrot.lane.b32.xlu1 %v546_v22, %s1787_s4  ;;  %v548_v23 = vadd.f32 %v546_v22, %v1953_v38 }
 0x842   :  { %v1396_v24 = vmul.f32 -1.442695, %v548_v23 }
 0x844   :  { %1712 = vpow2.f32 %v1396_v24 }
 0x84e   :  { %v1713_v25 = vpop.eup %1712 }
 0x84f   :  { %v552_v26 = vadd.f32 1.0, %v1713_v25 }
 0x851   :  { %1714 = vrcp.f32 %v552_v26 }
 0x85b   :  { %v1715_v27 = vpop.eup %1714 }
 0x8b2   :  { %v556_v29 = vpop.permute.xlu1 %555 }
 0x8b3   :  { %v558_v30 = vmul.f32 %v1715_v27, %v556_v29 }
 0x8b5   :  { %560 = vrot.lane.b32.xlu0 %v558_v30, %s1787_s4 }
 0x927   :  { %v561_v31 = vpop.permute.xlu0 %560 }
 0x928   :  { %v563_v32 = vadd.f32 %v561_v31, %v1953_v38 }
 0x92a   :  { %1716 = vtanh.f32 %v563_v32 }
 0x934   :  { %v1717_v33 = vpop.eup %1716 }
 0x935   :  { %v566_v34 = vrot.slane %v1717_v33, 2 }
 0x937   :  { %v568_v35 = vsub.f32 %v1978_v16, %v566_v34 }
 0x939   :  { %v570_v37 = vrot.slane %v568_v35, 6 }
 0x93b   :  { %571 = vrot.lane.b32.xlu1 %v570_v37, %s1789_s21 }
 0x9ad   :  { %v572_v39 = vpop.permute.xlu1 %571 }
 0x9ae   :  { %v574_v40 = vmul.f32 %v1715_v27, %v572_v39 }
 0x9b0   :  { %576 = vrot.lane.b32.xlu0 %v574_v40, %s1788_s5 }
 0xa22   :  { %v577_v41 = vpop.permute.xlu0 %576 }
 0xa23   :  { %v1997_v42 = vadd.f32 %v1717_v33, %v577_v41 }
 0xa25   :  { %v586_v43 = vrot.slane %v1997_v42, 4 }
 0xa27   :  { %587 = vrot.lane.b32.xlu1 %v586_v43, %s1787_s4 }
 0xa99   :  { %v588_v44 = vpop.permute.xlu1 %587 }
 0xa9a   :  { %1541 = vmatmul.mubr.msk.f32.vlgmr.msra.gmra.mrb[4].mxu1 %vm57_vm0, %v588_v44 }
 0xa9b   :  { %1657 = vmatpush3.bf16.msra.mxu1 %v1886_v10  ;;  %1562 = vmatprep.mubr.msk.f32.mxu1 %vm1785_vm1, %v1786_v15 }
 0xa9c   :  { %1658 = vmatprep.subr.bf16.mxu1 %v1784_v11 }
 0xa9f   :  { %1660 = vmatpush3.bf16.msra.mxu1 %v1897_v14 }
 0xaa0   :  { %1667 = vmatprep.subr.bf16.mxu1 %v1784_v11 }
 0xb6d   :  { %v657_v45 = vpop.f32.mrb[4].mxu1 }
 0xb6e   :  { %v658_v46 = vadd.f32 %v1936_v28, %v657_v45  ;;  %v1542_v47 = vpop.f32.mrb[5].mxu1 }
 0xb70   :  { %v662_v48 = vrot.slane %v658_v46, 2 }
 0xb72   :  { %671 = vrot.lane.b32.xlu0 %v662_v48, %s1787_s4  ;;  %v664_v49 = vadd.f32 %v662_v48, %v1953_v38 }
 0xb74   :  { %v1398_v50 = vmul.f32 -1.442695, %v664_v49 }
 0xb76   :  { %1718 = vpow2.f32 %v1398_v50 }
 0xb80   :  { %v1719_v51 = vpop.eup %1718 }
 0xb81   :  { %v668_v52 = vadd.f32 1.0, %v1719_v51 }
 0xb83   :  { %1720 = vrcp.f32 %v668_v52 }
 0xb8d   :  { %v1721_v53 = vpop.eup %1720 }
 0xbe4   :  { %v672_v54 = vpop.permute.xlu0 %671 }
 0xbe5   :  { %v674_v55 = vmul.f32 %v1721_v53, %v672_v54 }
 0xbe7   :  { %676 = vrot.lane.b32.xlu1 %v674_v55, %s1787_s4 }
 0xc59   :  { %v677_v56 = vpop.permute.xlu1 %676 }
 0xc5a   :  { %v679_v57 = vadd.f32 %v677_v56, %v1953_v38 }
 0xc5c   :  { %1722 = vtanh.f32 %v679_v57 }
 0xc66   :  { %v1723_v58 = vpop.eup %1722 }
 0xc67   :  { %v682_v59 = vrot.slane %v1723_v58, 2 }
 0xc69   :  { %v684_v60 = vsub.f32 %v1997_v42, %v682_v59 }
 0xc6b   :  { %v686_v61 = vrot.slane %v684_v60, 6 }
 0xc6d   :  { %687 = vrot.lane.b32.xlu0 %v686_v61, %s1789_s21 }
 0xcdf   :  { %v688_v62 = vpop.permute.xlu0 %687 }
 0xce0   :  { %v690_v63 = vmul.f32 %v1721_v53, %v688_v62 }
 0xce2   :  { %692 = vrot.lane.b32.xlu1 %v690_v63, %s1788_s5 }
 0xd54   :  { %v693_v0 = vpop.permute.xlu1 %692 }
 0xd55   :  { %v2016_v1 = vadd.f32 %v1723_v58, %v693_v0 }
 0xd57   :  { %v702_v2 = vrot.slane %v2016_v1, 6 }
 0xd59   :  { %703 = vrot.lane.b32.xlu0 %v702_v2, %s1787_s4 }
 0xdcb   :  { %v704_v38 = vpop.permute.xlu0 %703 }
 0xdcc   :  { %1552 = vmatmul.mubr.msk.f32.vlgmr.msra.gmra.mrb[6].mxu0 %vm57_vm0, %v704_v38 }
 0xdcd   :  { %1663 = vmatpush3.bf16.msra.mxu0 %v1886_v10  ;;  %1573 = vmatprep.mubr.msk.f32.mxu0 %vm1785_vm1, %v1786_v15 }
 0xdce   :  { %1664 = vmatprep.subr.bf16.mxu0 %v1784_v11 }
 0xdd1   :  { %1666 = vmatpush3.bf16.msra.mxu0 %v1897_v14 }
 0xe9f   :  { %v773_v3 = vpop.f32.mrb[6].mxu0 }
 0xea0   :  { %v774_v4 = vadd.f32 %v1936_v28, %v773_v3  ;;  %v1553_v5 = vpop.f32.mrb[7].mxu0 }
 0xea2   :  { %785 = vrot.lane.b32.xlu1 %v774_v4, %s1787_s4  ;;  %v777_v6 = vadd.f32 %v774_v4, %v1951_v36 }
 0xea4   :  { %v1400_v7 = vmul.f32 -1.442695, %v777_v6 }
 0xea6   :  { %1724 = vpow2.f32 %v1400_v7 }
 0xeb0   :  { %v1725_v8 = vpop.eup %1724 }
 0xeb1   :  { %v781_v9 = vadd.f32 1.0, %v1725_v8 }
 0xeb3   :  { %1726 = vrcp.f32 %v781_v9 }
 0xebd   :  { %v1727_v12 = vpop.eup %1726 }
 0xf14   :  { %v786_v13 = vpop.permute.xlu1 %785 }
 0xf15   :  { %v788_v17 = vmul.f32 %v1727_v12, %v786_v13 }
 0xf17   :  { %790 = vrot.lane.b32.xlu0 %v788_v17, %s1787_s4 }
 0xf89   :  { %v791_v18 = vpop.permute.xlu0 %790 }
 0xf8a   :  { %v793_v19 = vadd.f32 %v791_v18, %v1951_v36 }
 0xf8c   :  { %1728 = vtanh.f32 %v793_v19 }
 0xf96   :  { %v1729_v20 = vpop.eup %1728 }
 0xf97   :  { %v796_v21 = vrot.slane %v1729_v20, 2 }
 0xf99   :  { %v798_v22 = vsub.f32 %v2016_v1, %v796_v21 }
 0xf9b   :  { %v800_v23 = vrot.slane %v798_v22, 6 }
 0xf9d   :  { %801 = vrot.lane.b32.xlu1 %v800_v23, %s1789_s21 }
0x100f   :  { %v802_v24 = vpop.permute.xlu1 %801 }
0x1010   :  { %v804_v25 = vmul.f32 %v1727_v12, %v802_v24 }
0x1012   :  { %806 = vrot.lane.b32.xlu0 %v804_v25, %s1788_s5 }
0x1084   :  { %v807_v26 = vpop.permute.xlu0 %806 }
0x1085   :  { %v809_v27 = vadd.f32 %v1729_v20, %v807_v26 }
0x1087   :  { %811 = vrot.lane.b32.xlu1 %v809_v27, %s1787_s4 }
0x10f9   :  { %v812_v29 = vpop.permute.xlu1 %811 }
0x10fa   :  { %814 = vst.msk [vmem:[#allocation2 + $0x8] sm:$0x3] %vm355_vm2, %v812_v29  ;;  %1563 = vmatmul.mubr.msk.f32.vlgmr.msra.gmra.mrb[6].mxu1 %vm57_vm0, %v812_v29 }
0x10fb   :  { %1669 = vmatpush3.bf16.msra.mxu1 %v1886_v10  ;;  %1584 = vmatprep.mubr.msk.f32.mxu1 %vm1785_vm1, %v1786_v15 }
0x10fc   :  { %1670 = vmatprep.subr.bf16.mxu1 %v1784_v11 }
0x10ff   :  { %1672 = vmatpush3.bf16.msra.mxu1 %v1897_v14 }
0x11cd   :  { %v883_v30 = vpop.f32.mrb[6].mxu1 }
0x11ce   :  { %v884_v31 = vadd.f32 %v1936_v28, %v883_v30  ;;  %v1564_v32 = vpop.f32.mrb[7].mxu1 }
0x11d0   :  { %v888_v33 = vrot.slane %v884_v31, 6 }
0x11d2   :  { %897 = vrot.lane.b32.xlu0 %v888_v33, %s1787_s4  ;;  %v890_v34 = vadd.f32 %v888_v33, %v1951_v36 }
0x11d4   :  { %v1402_v35 = vmul.f32 -1.442695, %v890_v34 }
0x11d6   :  { %1730 = vpow2.f32 %v1402_v35 }
0x11e0   :  { %v1731_v37 = vpop.eup %1730 }
0x11e1   :  { %v894_v10 = vadd.f32 1.0, %v1731_v37  ;;  %v1161_v37 = vld [vmem:[%s2148_s8 + $0x8] sm:$0xff] }
0x11e3   :  { %1732 = vrcp.f32 %v894_v10 }
0x11ed   :  { %v1733_v39 = vpop.eup %1732 }
0x1244   :  { %v898_v15 = vpop.permute.xlu0 %897 }
0x1245   :  { %v900_v40 = vmul.f32 %v1733_v39, %v898_v15 }
0x1247   :  { %902 = vrot.lane.b32.xlu1 %v900_v40, %s1787_s4 }
0x12b9   :  { %v903_v11 = vpop.permute.xlu1 %902 }
0x12ba   :  { %v905_v14 = vadd.f32 %v903_v11, %v1951_v36 }
0x12bc   :  { %1734 = vtanh.f32 %v905_v14 }
0x12c6   :  { %v1735_v41 = vpop.eup %1734 }
0x12c7   :  { %v908_v43 = vrot.slane %v1735_v41, 2 }
0x12c9   :  { %v910_v44 = vsub.f32 %v809_v27, %v908_v43 }
0x12cb   :  { %v912_v45 = vrot.slane %v910_v44, 6 }
0x12cd   :  { %913 = vrot.lane.b32.xlu0 %v912_v45, %s1789_s21 }
0x133f   :  { %v914_v46 = vpop.permute.xlu0 %913 }
0x1340   :  { %v916_v47 = vmul.f32 %v1733_v39, %v914_v46  ;;  %v1163_v39 = vld [vmem:[%s2148_s8 + $0x18] sm:$0xff]  ;;  %v1254_v46 = vld [vmem:[%s2150_s10] sm:$0xff] }
0x1342   :  { %918 = vrot.lane.b32.xlu1 %v916_v47, %s1788_s5  ;;  %v1255_v47 = vld [vmem:[%s2150_s10 + $0x8] sm:$0xff] }
0x13b4   :  { %v919_v48 = vpop.permute.xlu1 %918 }
0x13b5   :  { %v2049_v49 = vadd.f32 %v1735_v41, %v919_v48  ;;  %v1256_v48 = vld [vmem:[%s2150_s10 + $0x10] sm:$0xff] }
0x13b7   :  { %v927_v50 = vrot.slane %v2049_v49, 2 }
0x13b9   :  { %928 = vrot.lane.b32.xlu0 %v927_v50, %s1787_s4  ;;  %v1257_v50 = vld [vmem:[%s2150_s10 + $0x18] sm:$0xff] }
0x142b   :  { %v929_v51 = vpop.permute.xlu0 %928 }
0x142c   :  { %1574 = vmatmul.mubr.msk.f32.vlgmr.msra.gmra.mrb[8].mxu0 %vm57_vm0, %v929_v51  ;;  %v1685_v51 = vpack.c.bf16 %v1257_v50, %v1256_v48 }
0x14ff   :  { %v998_v52 = vpop.f32.mrb[8].mxu0 }
0x1500   :  { %v999_v53 = vadd.f32 %v1936_v28, %v998_v52  ;;  %v1575_v54 = vpop.f32.mrb[9].mxu0  ;;  %v1407_v52 = vld [vmem:[%s2149_s9] ss:$0 sm:$0xff]  ;;  %s1790_s9 = smov [#allocation3]  }
0x1502   :  { %v1003_v55 = vrot.slane %v999_v53, 4 }
0x1504   :  { %1012 = vrot.lane.b32.xlu1 %v1003_v55, %s1787_s4  ;;  %v1005_v56 = vadd.f32 %v1003_v55, %v1951_v36 }
0x1506   :  { %v1404_v57 = vmul.f32 -1.442695, %v1005_v56 }
0x1508   :  { %1736 = vpow2.f32 %v1404_v57 }
0x1512   :  { %v1737_v58 = vpop.eup %1736 }
0x1513   :  { %v1009_v59 = vadd.f32 1.0, %v1737_v58 }
0x1515   :  { %1738 = vrcp.f32 %v1009_v59  ;;  %v1410_v59 = vld [vmem:[%s2151_s11] ss:$0 sm:$0xff]  ;;  %s1374_s11 = sshll.u32 %s1790_s9, 4  ;;  %s1375_s11 = int_to_ptr.vmem [resolvable:$true] %s1374_s11 }
0x1516   :  { %s1760_s19 = scalar_lea.vmem %s1375_s11, 32  ;;  %p1765_p1 = scmp.lt.s32.totalorder %s1375_s11, %s1375_s11 }
0x1517   :  { %p1761_p0 = scmp.ne.s32.totalorder %s1375_s11, %s1760_s19  ;;  %p1766_p2 = scmp.lt.s32.totalorder %s1760_s19, %s1760_s19 }
0x1519   :  { %p1767_p3 = por %p1766_p2, %p1765_p1 }
0x151b   :  { %p1768_p4 = pnand %p1767_p3, %p1761_p0 }
0x151f   :  { %v1739_v60 = vpop.eup %1738 }
0x1576   :  { %v1013_v61 = vpop.permute.xlu1 %1012 }
0x1577   :  { %v1015_v62 = vmul.f32 %v1739_v60, %v1013_v61 }
0x1579   :  { %1017 = vrot.lane.b32.xlu0 %v1015_v62, %s1787_s4 }
0x15eb   :  { %v1018_v63 = vpop.permute.xlu0 %1017 }
0x15ec   :  { %v1020_v0 = vadd.f32 %v1018_v63, %v1951_v36 }
0x15ee   :  { %1740 = vtanh.f32 %v1020_v0 }
0x15f8   :  { %v1741_v2 = vpop.eup %1740 }
0x15f9   :  { %v1023_v38 = vrot.slane %v1741_v2, 2 }
0x15fb   :  { %v1025_v3 = vsub.f32 %v2049_v49, %v1023_v38 }
0x15fd   :  { %v1027_v4 = vrot.slane %v1025_v3, 6 }
0x15ff   :  { %1028 = vrot.lane.b32.xlu1 %v1027_v4, %s1789_s21 }
0x1671   :  { %v1029_v5 = vpop.permute.xlu1 %1028 }
0x1672   :  { %v1031_v6 = vmul.f32 %v1739_v60, %v1029_v5 }
0x1674   :  { %1033 = vrot.lane.b32.xlu0 %v1031_v6, %s1788_s5 }
0x16e6   :  { %v1034_v7 = vpop.permute.xlu0 %1033 }
0x16e7   :  { %v1036_v8 = vadd.f32 %v1741_v2, %v1034_v7 }
0x16e9   :  { %v1042_v9 = vrot.slane %v1036_v8, 4 }
0x16eb   :  { %1043 = vrot.lane.b32.xlu1 %v1042_v9, %s1787_s4 }
0x175d   :  { %v1044_v12 = vpop.permute.xlu1 %1043 }
0x175e   :  { %1585 = vmatmul.mubr.msk.f32.vlgmr.msra.gmra.mrb[8].mxu1 %vm57_vm0, %v1044_v12 }
0x1831   :  { %v1113_v13 = vpop.f32.mrb[8].mxu1 }
0x1832   :  { %v1114_v17 = vadd.f32 %v1936_v28, %v1113_v13  ;;  %v1586_v18 = vpop.f32.mrb[9].mxu1 }
0x1834   :  { %v1118_v19 = vrot.slane %v1114_v17, 2 }
0x1836   :  { %1127 = vrot.lane.b32.xlu0 %v1118_v19, %s1787_s4  ;;  %v1120_v20 = vadd.f32 %v1118_v19, %v1951_v36 }
0x1838   :  { %v1406_v21 = vmul.f32 -1.442695, %v1120_v20 }
0x183a   :  { %1742 = vpow2.f32 %v1406_v21 }
0x1844   :  { %v1743_v22 = vpop.eup %1742 }
0x1845   :  { %v1124_v23 = vadd.f32 1.0, %v1743_v22 }
0x1847   :  { %1744 = vrcp.f32 %v1124_v23 }
0x1851   :  { %v1745_v24 = vpop.eup %1744 }
0x18a8   :  { %v1128_v25 = vpop.permute.xlu0 %1127 }
0x18a9   :  { %v1130_v26 = vmul.f32 %v1745_v24, %v1128_v25 }
0x18ab   :  { %1132 = vrot.lane.b32.xlu1 %v1130_v26, %s1787_s4 }
0x191d   :  { %v1133_v27 = vpop.permute.xlu1 %1132 }
0x191e   :  { %v1135_v29 = vadd.f32 %v1133_v27, %v1951_v36 }
0x1920   :  { %1746 = vtanh.f32 %v1135_v29 }
0x192a   :  { %v1747_v28 = vpop.eup %1746 }
0x192b   :  { %v1138_v30 = vrot.slane %v1747_v28, 2 }
0x192d   :  { %v1140_v31 = vsub.f32 %v1036_v8, %v1138_v30 }
0x192f   :  { %v1142_v32 = vrot.slane %v1140_v31, 6 }
0x1931   :  { %1143 = vrot.lane.b32.xlu0 %v1142_v32, %s1789_s21 }
0x1935   :  { %465 = vrot.lane.b32.xlu0 %v1978_v16, %s1787_s4 }
0x1939   :  { %697 = vrot.lane.b32.xlu0 %v2016_v1, %s1787_s4  ;;  %v1160_v1 = vld [vmem:[%s2148_s8] sm:$0xff] }
0x193a   :  { %v1673_v10 = vpack.c.bf16 %v1161_v37, %v1160_v1 }
0x193c   :  { %1674 = vmatprep.subr.bf16.mxu0 %v1673_v10 }
0x193d   :  { %1038 = vrot.lane.b32.xlu0 %v1036_v8, %s1787_s4  ;;  %1676 = vmatpush3.bf16.msra.mxu0 %v1673_v10 }
0x19a3   :  { %v1144_v33 = vpop.permute.xlu0 %1143 }
0x19a4   :  { %v1146_v34 = vmul.f32 %v1745_v24, %v1144_v33 }
0x19a6   :  { %1148 = vrot.lane.b32.xlu1 %v1146_v34, %s1788_s5 }
0x19a7   :  { %v466_v36 = vpop.permute.xlu0 %465 }
0x19a8   :  { %469 = vst.msk [vmem:[#allocation2] sm:$0xc] %vm468_vm3, %v466_v36 }
0x19aa   :  { %581 = vrot.lane.b32.xlu1 %v1997_v42, %s1787_s4  ;;  %v1162_v42 = vld [vmem:[%s2148_s8 + $0x10] sm:$0xff] }
0x19ab   :  { %v698_v35 = vpop.permute.xlu0 %697  ;;  %v1677_v15 = vpack.c.bf16 %v1163_v39, %v1162_v42 }
0x19ac   :  { %701 = vst.msk [vmem:[#allocation2] sm:$0xc0] %vm700_vm4, %v698_v35 }
0x19ad   :  { %1678 = vmatprep.subr.bf16.mxu0 %v1677_v15 }
0x19ae   :  { %923 = vrot.lane.b32.xlu1 %v2049_v49, %s1787_s4  ;;  %1680 = vmatpush3.bf16.msra.mxu0 %v1677_v15  ;;  %v1681_v49 = vpack.c.bf16 %v1255_v47, %v1254_v46 }
0x19af   :  { %v1039_v16 = vpop.permute.xlu0 %1038 }
0x19b0   :  { %1041 = vst.msk [vmem:[#allocation2 + $0x8] sm:$0x30] %vm584_vm5, %v1039_v16  ;;  %1682 = vmatprep.subr.bf16.mxu1 %v1681_v49 }
0x19b1   :  { %1684 = vmatpush3.bf16.msra.mxu1 %v1681_v49 }
0x19b2   :  { %1686 = vmatprep.subr.bf16.mxu1 %v1685_v51 }
0x19b5   :  { %1688 = vmatpush3.bf16.msra.mxu1 %v1685_v51 }
0x1a18   :  { %v1149_v40 = vpop.permute.xlu1 %1148 }
0x1a19   :  { %v1151_v11 = vadd.f32 %v1747_v28, %v1149_v40 }
0x1a1b   :  { %1153 = vrot.lane.b32.xlu1 %v1151_v11, %s1787_s4 }
0x1a1c   :  { %v582_v14 = vpop.permute.xlu1 %581 }
0x1a1d   :  { %585 = vst.msk [vmem:[#allocation2] sm:$0x30] %vm584_vm5, %v582_v14 }
0x1a20   :  { %v924_v41 = vpop.permute.xlu1 %923 }
0x1a21   :  { %926 = vst.msk [vmem:[#allocation2 + $0x8] sm:$0xc] %vm468_vm3, %v924_v41 }
0x1a24   :  { %v1158_v43 = vld [vmem:[#allocation2] sm:$0xff] }
0x1a25   :  { %1595 = vmatprep.mubr.msk.f32.mxu0 %vm57_vm0, %v1158_v43 }
0x1a8d   :  { %v1154_v44 = vpop.permute.xlu1 %1153 }
0x1a8e   :  { %1156 = vst.msk [vmem:[#allocation2 + $0x8] sm:$0xc0] %vm700_vm4, %v1154_v44  ;;  %1157 = vst.msk [vmem:[#allocation3 - $0x6] sm:$0xc0] %vm700_vm4, %v1154_v44 }
0x1a95   :  { %v1159_v45 = vld [vmem:[#allocation2 + $0x8] sm:$0xff] }
0x1a96   :  { %1596 = vmatmul.mubr.msk.f32.vlgmr.msra.gmra.mrb[10].mxu0 %vm57_vm0, %v1159_v45 }
0x1b69   :  { %v1597_v53 = vpop.f32.mrb[10].mxu0 }
0x1b6a   :  { %v1249_v54 = vadd.f32 %v1597_v53, %v1407_v52  ;;  %v1243_v55 = vpop.f32.mrb[11].mxu0 }
0x1b6b   :  { %v1244_v56 = vadd.f32 %v1407_v52, %v1243_v55 }
0x1b6d   :  { %1748 = vtanh.f32 %v1244_v56 }
0x1b6e   :  { %1750 = vtanh.f32 %v1249_v54 }
0x1b77   :  { %v1749_v57 = vpop.eup %1748 }
0x1b78   :  { %v1751_v58 = vpop.eup %1750  ;;  %1606 = vmatprep.mubr.msk.f32.mxu1 %vm57_vm0, %v1749_v57 }
0x1b79   :  { %1607 = vmatmul.mubr.msk.f32.vlgmr.msra.gmra.mrb[10].mxu1 %vm57_vm0, %v1751_v58 }
0x1c4c   :  { %v1608_v60 = vpop.f32.mrb[10].mxu1 }
0x1c4d   :  { %v1343_v61 = vadd.f32 %v1608_v60, %v1410_v59  ;;  %v1337_v62 = vpop.f32.mrb[11].mxu1 }
0x1c4e   :  { %v1338_v63 = vadd.f32 %v1410_v59, %v1337_v62 }
0x1c4f   :  { %1348 = vmax.xlane.f32.xlu1 %v1343_v61 }
0x1c50   :  { %1346 = vmax.xlane.f32.xlu0 %v1338_v63 }
0x1cdc   :  { %v1349_v0 = vpop.xlane.xlu1 %1348 }
0x1cdd   :  { %v1347_v2 = vpop.xlane.xlu0 %1346  ;;  %v1351_v38 = vsub.f32 %v1343_v61, %v1349_v0 }
0x1cde   :  { %v1350_v3 = vsub.f32 %v1338_v63, %v1347_v2 }
0x1cdf   :  { %v1354_v5 = vmul.f32 1.442695, %v1351_v38 }
0x1ce0   :  { %v1352_v4 = vmul.f32 1.442695, %v1350_v3 }
0x1ce2   :  { %1752 = vpow2.f32 %v1352_v4 }
0x1ce3   :  { %1754 = vpow2.f32 %v1354_v5 }
0x1cec   :  { %v1753_v6 = vpop.eup %1752 }
0x1ced   :  { %1356 = vadd.xlane.f32.xlu0 %v1753_v6  ;;  %v1755_v7 = vpop.eup %1754 }
0x1cf1   :  { %1358 = vadd.xlane.f32.xlu0 %v1755_v7 }
0x1cf2   :  { %1771 = shalt.err (!%p1768_p4)
}
0x1cf3   :  { %s1772_s3 = scalar_lea.hbm %s2153_s13, 32 }
0x1cf4   :  { %p1773_p5 = scmp.ne.s32.totalorder %s2153_s13, %s1772_s3  ;;  %p1776_p6 = scmp.lt.u32.totalorder %s1772_s3, %s2153_s13 }
0x1cf6   :  { %p1778_p7 = pnand %p1776_p6, %p1773_p5 }
0x1cf8   :  { %1781 = shalt.err (!%p1778_p7)
}
0x1cf9   :  { %1377 = dma.vmem_to_hbm [thread:$0]  %s1375_s11, 32, %s2153_s13, [#allocation4]  }
0x1d7a   :  { %v1357_v8 = vpop.xlane.xlu0 %1356 }
0x1d7b   :  { %1756 = vrcp.f32 %v1357_v8 }
0x1d7e   :  { %v1359_v9 = vpop.xlane.xlu0 %1358 }
0x1d7f   :  { %1758 = vrcp.f32 %v1359_v9 }
0x1d85   :  { %v1757_v12 = vpop.eup %1756 }
0x1d86   :  { %v1361_v13 = vmul.f32 %v1757_v12, %v1753_v6 }
0x1d88   :  { %1364 = vst [vmem:[%s2152_s12] sm:$0xff] %v1361_v13 }
0x1d89   :  { %v1759_v17 = vpop.eup %1758 }
0x1d8a   :  { %v1363_v18 = vmul.f32 %v1759_v17, %v1755_v7 }
0x1d8c   :  { %1365 = vst [vmem:[%s2152_s12 + $0x8] sm:$0xff] %v1363_v18 }
0x1d8d   :  { %1782 = dma.done.wait [#allocation4], 32  }
0x1d8e   :  { %1783 = vsyncadd [#allocation4], 4294967264 }
0x1d8f   :  { %1383 = vsyncpa [#allocation4], 1 }

</bundles_post_ra>
